<compile_context>
chip_gen: v7x
topology: tpu7x:2x2x1
jax: 0.10.0
libtpu: 0.0.40
codegen_flags: <defaults>
</compile_context>

<pallas_src>
import jax
import jax.numpy as jnp
from jax.experimental import pallas as pl
from jax.experimental.pallas import tpu as pltpu


def _pick_tile(full, pref, align):
    """Largest tile <= pref that is a multiple of `align` and divides `full`;
    falls back to the full dimension (always legal for BlockSpec)."""
    if full <= pref:
        return full
    t = (pref // align) * align
    while t >= align:
        if full % t == 0:
            return t
        t -= align
    return full


def _make_mrl_kernel(bounds, num_outputs):
    """Kernel: refs = (x, wl_t, bias, out_0..out_{N-1}, acc_scratch).

    x_ref:   (TB, D)       compute dtype
    w_ref:   (D, TO)       compute dtype   (W_linear.T, possibly O-padded)
    b_ref:   (1, TO)       f32             (bias, possibly O-padded)
    out_i:   (TB, TO)      f32
    acc_ref: (TB, TO)      f32 VMEM scratch
    """

    def kernel(*refs):
        x_ref, w_ref, b_ref = refs[0], refs[1], refs[2]
        out_refs = refs[3:3 + num_outputs]
        acc_ref = refs[3 + num_outputs]

        # Bias folded into accumulator init: one broadcast total, not N.
        acc_ref[...] = jnp.broadcast_to(
            b_ref[...].astype(jnp.float32), acc_ref.shape)

        # Fully unrolled static loop over nesting deltas (bounds are static).
        for i in range(num_outputs):
            lo, hi = bounds[i], bounds[i + 1]
            acc_ref[...] += jnp.dot(
                x_ref[:, lo:hi], w_ref[lo:hi, :],
                preferred_element_type=jnp.float32)
            out_refs[i][...] = acc_ref[...].astype(out_refs[i].dtype)

    return kernel


def matryoshka_projector_fwd(x, w_hidden, b_hidden, w_linear, b_linear,
                             nesting_dims, *, compute_dtype=jnp.float32):
    """x: [B, D]. Returns a list of [B, out_dims] arrays (one per nesting dim).

    Set compute_dtype=jnp.bfloat16 on v6e/v7x for the fast MXU path (f32
    accumulation is kept); numerics then differ slightly from the f32 reference.
    """
    nesting_dims = tuple(int(d) for d in nesting_dims)
    N = len(nesting_dims)
    B, D = x.shape
    O = w_linear.shape[0]

    assert all(a < b for a, b in zip(nesting_dims, nesting_dims[1:])), (
        "nesting_dims must be strictly ascending")
    assert nesting_dims[-1] <= D and nesting_dims[-1] <= w_linear.shape[1]
    # Columns of x beyond nesting_dims[-1] are never read — same as reference.

    # Hidden branch (proj_hidden + ReLU) is discarded by the reference forward
    # before it can affect the returned logits, so its weights are not staged.
    del w_hidden, b_hidden

    x = x.astype(compute_dtype)
    wl_t = jnp.transpose(w_linear).astype(compute_dtype)     # (D, O)
    bl = b_linear.reshape(1, O).astype(jnp.float32)           # (1, O)

    # Lane-dense outputs: pad O up to a multiple of 128 (zero-padded weight /
    # bias columns), so stores are unmasked; unpad in the wrapper iff needed.
    LANE = 128
    O_pad = O if O % LANE == 0 else ((O + LANE - 1) // LANE) * LANE
    if O_pad != O:
        wl_t = jnp.pad(wl_t, ((0, 0), (0, O_pad - O)))
        bl = jnp.pad(bl, ((0, 0), (0, O_pad - O)))

    # Tiles sized for v7x's 64 MiB VMEM (also fine on v5e/v6e).
    TB = _pick_tile(B, 256, 8)
    TO = _pick_tile(O_pad, 512, LANE)
    grid = (B // TB, O_pad // TO)

    bounds = (0,) + nesting_dims
    itemsize = jnp.dtype(compute_dtype).itemsize

    # Rough per-core VMEM budget (double buffers on pipelined operands).
    vmem_est = (2 * (TB * D * itemsize + D * TO * itemsize + TO * 4)
                + 2 * N * TB * TO * 4 + TB * TO * 4)
    vmem_limit = int(min(max(2 * vmem_est, 32 * 1024 * 1024),
                         64 * 1024 * 1024))

    out_shapes = tuple(jax.ShapeDtypeStruct((B, O_pad), jnp.float32)
                       for _ in range(N))
    out_specs = tuple(pl.BlockSpec((TB, TO), lambda bi, oj: (bi, oj))
                      for _ in range(N))

    outs = pl.pallas_call(
        _make_mrl_kernel(bounds, N),
        out_shape=out_shapes,
        grid=grid,
        in_specs=[
            pl.BlockSpec((TB, D), lambda bi, oj: (bi, 0)),   # x tile (full D)
            pl.BlockSpec((D, TO), lambda bi, oj: (0, oj)),   # W.T tile (full D)
            pl.BlockSpec((1, TO), lambda bi, oj: (0, oj)),   # bias tile
        ],
        out_specs=out_specs,
        scratch_shapes=[pltpu.VMEM((TB, TO), jnp.float32)],
        compiler_params=pltpu.CompilerParams(
            dimension_semantics=("parallel", "parallel"),
            vmem_limit_bytes=vmem_limit),
    )(x, wl_t, bl)

    if O_pad != O:
        outs = tuple(o[:, :O] for o in outs)
    return list(outs)


def _reference_fwd(x, w_hidden, b_hidden, w_linear, b_linear, nesting_dims):
    outs = []
    for d in nesting_dims:
        h = jnp.maximum(x[:, :d] @ w_hidden[:, :d].T + b_hidden, 0.0)
        del h  # discarded, matching the PyTorch module
        outs.append(x[:, :d] @ w_linear[:, :d].T + b_linear)
    return outs


if __name__ == "__main__":
    # Small deterministic setup consistent with the module:
    nesting_dims = (8, 16, 32)       # nesting_dims[-1] == hidden/input dim
    D = nesting_dims[-1]             # 32
    out_dims = 16
    B = 8

    key = jax.random.PRNGKey(0)
    k1, k2, k3, k4, k5 = jax.random.split(key, 5)
    x = jax.random.normal(k1, (B, D), dtype=jnp.float32)
    w_hidden = jax.random.normal(k2, (D, D), dtype=jnp.float32) * 0.1
    b_hidden = jax.random.normal(k3, (D,), dtype=jnp.float32) * 0.1
    w_linear = jax.random.normal(k4, (out_dims, D), dtype=jnp.float32) * 0.1
    b_linear = jax.random.normal(k5, (out_dims,), dtype=jnp.float32) * 0.1

    outs = matryoshka_projector_fwd(x, w_hidden, b_hidden, w_linear, b_linear,
                                    nesting_dims)
    outs = [jax.block_until_ready(o) for o in outs]

    refs = _reference_fwd(x, w_hidden, b_hidden, w_linear, b_linear,
                          nesting_dims)
    for o, r in zip(outs, refs):
        assert o.shape == (B, out_dims)
        assert jnp.allclose(o, r, atol=1e-4, rtol=1e-4), (
            float(jnp.max(jnp.abs(o - r))))

    print("KERNEL_OK")
</pallas_src>

<mosaic_0001>
module attributes {stable_mosaic.version = 11 : i64} {
  func.func @kernel(%arg0: i32, %arg1: i32, %arg2: memref<8x32xf32, #tpu.memory_space<vmem>>, %arg3: memref<32x128xf32, #tpu.memory_space<vmem>>, %arg4: memref<1x128xf32, #tpu.memory_space<vmem>>, %arg5: memref<8x128xf32, #tpu.memory_space<vmem>>, %arg6: memref<8x128xf32, #tpu.memory_space<vmem>>, %arg7: memref<8x128xf32, #tpu.memory_space<vmem>>, %arg8: memref<8x128xf32, #tpu.memory_space<vmem>>) attributes {dimension_semantics = [#tpu.dimension_semantics<parallel>, #tpu.dimension_semantics<parallel>], iteration_bounds = array<i64: 1, 1>, scalar_prefetch = 0 : i64, scratch_operands = 1 : i64, tpu.core_type = #tpu.core_type<tc>, window_params = [{transform_indices = @transform_0, window_bounds = array<i64: 8, 32>}, {transform_indices = @transform_1, window_bounds = array<i64: 32, 128>}, {transform_indices = @transform_2, window_bounds = array<i64: 1, 128>}, {transform_indices = @transform_3, window_bounds = array<i64: 8, 128>}, {transform_indices = @transform_4, window_bounds = array<i64: 8, 128>}, {transform_indices = @transform_5, window_bounds = array<i64: 8, 128>}]} {
    %c0 = arith.constant 0 : index
    %c0_0 = arith.constant 0 : index
    %0 = vector.load %arg4[%c0, %c0_0] : memref<1x128xf32, #tpu.memory_space<vmem>>, vector<1x128xf32>
    %1 = vector.shape_cast %0 : vector<1x128xf32> to vector<1x128xf32>
    %2 = vector.broadcast %1 : vector<1x128xf32> to vector<8x128xf32>
    %c0_1 = arith.constant 0 : index
    %c0_2 = arith.constant 0 : index
    %3 = vector.load %arg8[%c0_1, %c0_2] : memref<8x128xf32, #tpu.memory_space<vmem>>, vector<8x128xf32>
    tpu.vector_store %arg8[%c0_1, %c0_2], %2 {strides = array<i32>} : memref<8x128xf32, #tpu.memory_space<vmem>>, vector<8x128xf32>,
    %c0_3 = arith.constant 0 : index
    %c0_4 = arith.constant 0 : index
    %4 = vector.load %arg8[%c0_3, %c0_4] : memref<8x128xf32, #tpu.memory_space<vmem>>, vector<8x128xf32>
    %c0_5 = arith.constant 0 : index
    %c0_6 = arith.constant 0 : index
    %5 = vector.load %arg2[%c0_5, %c0_6] : memref<8x32xf32, #tpu.memory_space<vmem>>, vector<8x8xf32>
    %c0_7 = arith.constant 0 : index
    %c0_8 = arith.constant 0 : index
    %6 = vector.load %arg3[%c0_7, %c0_8] : memref<32x128xf32, #tpu.memory_space<vmem>>, vector<8x128xf32>
    %cst = arith.constant dense<0.000000e+00> : vector<8x128xf32>
    %7 = tpu.matmul %5, %6, %cst {dimension_numbers = #tpu.dot_dimension_numbers<[1], [0], [0], [1], [0, 0, 1, 1], [], []>} : vector<8x8xf32>, vector<8x128xf32>, vector<8x128xf32> -> vector<8x128xf32>
    %8 = arith.addf %4, %7 : vector<8x128xf32>
    %c0_9 = arith.constant 0 : index
    %c0_10 = arith.constant 0 : index
    %9 = vector.load %arg8[%c0_9, %c0_10] : memref<8x128xf32, #tpu.memory_space<vmem>>, vector<8x128xf32>
    tpu.vector_store %arg8[%c0_9, %c0_10], %8 {strides = array<i32>} : memref<8x128xf32, #tpu.memory_space<vmem>>, vector<8x128xf32>,
    %c0_11 = arith.constant 0 : index
    %c0_12 = arith.constant 0 : index
    %10 = vector.load %arg8[%c0_11, %c0_12] : memref<8x128xf32, #tpu.memory_space<vmem>>, vector<8x128xf32>
    %c0_13 = arith.constant 0 : index
    %c0_14 = arith.constant 0 : index
    %11 = vector.load %arg5[%c0_13, %c0_14] : memref<8x128xf32, #tpu.memory_space<vmem>>, vector<8x128xf32>
    tpu.vector_store %arg5[%c0_13, %c0_14], %10 {strides = array<i32>} : memref<8x128xf32, #tpu.memory_space<vmem>>, vector<8x128xf32>,
    %c0_15 = arith.constant 0 : index
    %c0_16 = arith.constant 0 : index
    %12 = vector.load %arg8[%c0_15, %c0_16] : memref<8x128xf32, #tpu.memory_space<vmem>>, vector<8x128xf32>
    %c0_17 = arith.constant 0 : index
    %c8 = arith.constant 8 : index
    %13 = vector.load %arg2[%c0_17, %c8] : memref<8x32xf32, #tpu.memory_space<vmem>>, vector<8x8xf32>
    %c8_18 = arith.constant 8 : index
    %c0_19 = arith.constant 0 : index
    %14 = vector.load %arg3[%c8_18, %c0_19] : memref<32x128xf32, #tpu.memory_space<vmem>>, vector<8x128xf32>
    %cst_20 = arith.constant dense<0.000000e+00> : vector<8x128xf32>
    %15 = tpu.matmul %13, %14, %cst_20 {dimension_numbers = #tpu.dot_dimension_numbers<[1], [0], [0], [1], [0, 0, 1, 1], [], []>} : vector<8x8xf32>, vector<8x128xf32>, vector<8x128xf32> -> vector<8x128xf32>
    %16 = arith.addf %12, %15 : vector<8x128xf32>
    %c0_21 = arith.constant 0 : index
    %c0_22 = arith.constant 0 : index
    %17 = vector.load %arg8[%c0_21, %c0_22] : memref<8x128xf32, #tpu.memory_space<vmem>>, vector<8x128xf32>
    tpu.vector_store %arg8[%c0_21, %c0_22], %16 {strides = array<i32>} : memref<8x128xf32, #tpu.memory_space<vmem>>, vector<8x128xf32>,
    %c0_23 = arith.constant 0 : index
    %c0_24 = arith.constant 0 : index
    %18 = vector.load %arg8[%c0_23, %c0_24] : memref<8x128xf32, #tpu.memory_space<vmem>>, vector<8x128xf32>
    %c0_25 = arith.constant 0 : index
    %c0_26 = arith.constant 0 : index
    %19 = vector.load %arg6[%c0_25, %c0_26] : memref<8x128xf32, #tpu.memory_space<vmem>>, vector<8x128xf32>
    tpu.vector_store %arg6[%c0_25, %c0_26], %18 {strides = array<i32>} : memref<8x128xf32, #tpu.memory_space<vmem>>, vector<8x128xf32>,
    %c0_27 = arith.constant 0 : index
    %c0_28 = arith.constant 0 : index
    %20 = vector.load %arg8[%c0_27, %c0_28] : memref<8x128xf32, #tpu.memory_space<vmem>>, vector<8x128xf32>
    %c0_29 = arith.constant 0 : index
    %c16 = arith.constant 16 : index
    %21 = vector.load %arg2[%c0_29, %c16] : memref<8x32xf32, #tpu.memory_space<vmem>>, vector<8x16xf32>
    %c16_30 = arith.constant 16 : index
    %c0_31 = arith.constant 0 : index
    %22 = vector.load %arg3[%c16_30, %c0_31] : memref<32x128xf32, #tpu.memory_space<vmem>>, vector<16x128xf32>
    %cst_32 = arith.constant dense<0.000000e+00> : vector<8x128xf32>
    %23 = tpu.matmul %21, %22, %cst_32 {dimension_numbers = #tpu.dot_dimension_numbers<[1], [0], [0], [1], [0, 0, 1, 1], [], []>} : vector<8x16xf32>, vector<16x128xf32>, vector<8x128xf32> -> vector<8x128xf32>
    %24 = arith.addf %20, %23 : vector<8x128xf32>
    %c0_33 = arith.constant 0 : index
    %c0_34 = arith.constant 0 : index
    %25 = vector.load %arg8[%c0_33, %c0_34] : memref<8x128xf32, #tpu.memory_space<vmem>>, vector<8x128xf32>
    tpu.vector_store %arg8[%c0_33, %c0_34], %24 {strides = array<i32>} : memref<8x128xf32, #tpu.memory_space<vmem>>, vector<8x128xf32>,
    %c0_35 = arith.constant 0 : index
    %c0_36 = arith.constant 0 : index
    %26 = vector.load %arg8[%c0_35, %c0_36] : memref<8x128xf32, #tpu.memory_space<vmem>>, vector<8x128xf32>
    %c0_37 = arith.constant 0 : index
    %c0_38 = arith.constant 0 : index
    %27 = vector.load %arg7[%c0_37, %c0_38] : memref<8x128xf32, #tpu.memory_space<vmem>>, vector<8x128xf32>
    tpu.vector_store %arg7[%c0_37, %c0_38], %26 {strides = array<i32>} : memref<8x128xf32, #tpu.memory_space<vmem>>, vector<8x128xf32>,
    return
  }
  func.func @transform_0(%arg0: i32, %arg1: i32) -> (i32, i32) {
    %c0_i32 = arith.constant 0 : i32
    %c0_i32_0 = arith.constant 0 : i32
    return %arg0, %c0_i32 : i32, i32
  }
  func.func @transform_1(%arg0: i32, %arg1: i32) -> (i32, i32) {
    %c0_i32 = arith.constant 0 : i32
    %c0_i32_0 = arith.constant 0 : i32
    return %c0_i32, %arg1 : i32, i32
  }
  func.func @transform_2(%arg0: i32, %arg1: i32) -> (i32, i32) {
    %c0_i32 = arith.constant 0 : i32
    %c0_i32_0 = arith.constant 0 : i32
    return %c0_i32, %arg1 : i32, i32
  }
  func.func @transform_3(%arg0: i32, %arg1: i32) -> (i32, i32) {
    %c0_i32 = arith.constant 0 : i32
    return %arg0, %arg1 : i32, i32
  }
  func.func @transform_4(%arg0: i32, %arg1: i32) -> (i32, i32) {
    %c0_i32 = arith.constant 0 : i32
    return %arg0, %arg1 : i32, i32
  }
  func.func @transform_5(%arg0: i32, %arg1: i32) -> (i32, i32) {
    %c0_i32 = arith.constant 0 : i32
    return %arg0, %arg1 : i32, i32
  }
}

</mosaic_0001>

<bundles_post_ra>
// kernel: tpu_custom_call.1
= control target key start
LH: loop header
LB: loop body
LE: loop exit
PB: predicated region body
PF: predicated region fallthrough
CT: control target
= control target key end

     0   :  { %11 = vsyncpa [#allocation4], 0  ;;  %s621_s0 = inlined_call_operand.hbm [shape: f32[8,32], index: 0, kind: input, shape index: {}]   ;;  %s622_s1 = inlined_call_operand.hbm [shape: f32[32,128], index: 1, kind: input, shape index: {}]   ;;  %s623_s2 = inlined_call_operand.vmem [shape: f32[1,128], index: 2, kind: input, shape index: {}]   ;;  %s624_s3 = inlined_call_operand.hbm [shape: f32[8,128], index: 3, kind: output, shape index: {0}]   ;;  %s625_s4 = inlined_call_operand.hbm [shape: f32[8,128], index: 4, kind: output, shape index: {1}]   ;;  %s626_s5 = inlined_call_operand.hbm [shape: f32[8,128], index: 5, kind: output, shape index: {2}]  }
   0x1   :  { %12 = vsyncpa [#allocation7], 0 }
   0x2   :  { %13 = vsyncpa [#allocation5], 0 }
   0x3   :  { %14 = vsyncpa [#allocation10], 0  ;;  %s504_s18 = smov [#allocation3]   ;;  %s505_s20 = smov [#allocation6]  }
   0x4   :  { %s21_s19 = sshll.u32 %s504_s18, 4  ;;  %s30_s21 = sshll.u32 %s505_s20, 4  ;;  %s22_s19 = int_to_ptr.vmem [resolvable:$true] %s21_s19  ;;  %s546_s21 = int_to_ptr.vmem [resolvable:$true] %s30_s21 }
   0x5   :  { %s386_s24 = scalar_lea.hbm %s621_s0, 128 }
   0x6   :  { %p387_p0 = scmp.ne.s32.totalorder %s621_s0, %s386_s24  ;;  %p390_p1 = scmp.lt.u32.totalorder %s386_s24, %s621_s0 }
   0x8   :  { %p392_p2 = pnand %p390_p1, %p387_p0 }
   0xa   :  { %395 = shalt.err (!%p392_p2)
}
   0xb   :  { %s396_s29 = scalar_lea.vmem %s22_s19, 128  ;;  %p401_p4 = scmp.lt.s32.totalorder %s22_s19, %s22_s19 }
   0xc   :  { %p397_p3 = scmp.ne.s32.totalorder %s22_s19, %s396_s29  ;;  %p402_p5 = scmp.lt.s32.totalorder %s396_s29, %s396_s29 }
   0xe   :  { %p403_p6 = por %p402_p5, %p401_p4 }
  0x10   :  { %p404_p7 = pnand %p403_p6, %p397_p3 }
  0x12   :  { %407 = shalt.err (!%p404_p7)
}
  0x13   :  { %24 = dma.hbm_to_vmem [thread:$0]  %s621_s0, 128, %s22_s19, [#allocation4]  }
  0x14   :  { %s408_s9 = scalar_lea.hbm %s622_s1, 512 }
  0x15   :  { %p409_p8 = scmp.ne.s32.totalorder %s622_s1, %s408_s9  ;;  %p412_p9 = scmp.lt.u32.totalorder %s408_s9, %s622_s1 }
  0x17   :  { %p414_p10 = pnand %p412_p9, %p409_p8 }
  0x19   :  { %417 = shalt.err (!%p414_p10)
}
  0x1a   :  { %s418_s14 = scalar_lea.vmem %s546_s21, 512  ;;  %p423_p12 = scmp.lt.s32.totalorder %s546_s21, %s546_s21 }
  0x1b   :  { %p419_p11 = scmp.ne.s32.totalorder %s546_s21, %s418_s14  ;;  %p424_p13 = scmp.lt.s32.totalorder %s418_s14, %s418_s14 }
  0x1d   :  { %p425_p0 = por %p424_p13, %p423_p12 }
  0x1f   :  { %p426_p1 = pnand %p425_p0, %p419_p11 }
  0x21   :  { %429 = shalt.err (!%p426_p1)
}
  0x22   :  { %s506_s0 = smov 128   ;;  %s507_s15 = smov 8  }
  0x23   :  { %36 = dma.hbm_to_vmem [thread:$0]  %s622_s1, 512, %s546_s21, [#allocation7], %s506_s0, %s506_s0, %s507_s15  }
  0x24   :  { %496 = dma.done.wait [#allocation4], 128  }
  0x25   :  { %497 = vsyncadd [#allocation4], 4294967168 }
  0x26   :  { %498 = dma.done.wait [#allocation7], 512  }
  0x27   :  { %499 = vsyncadd [#allocation7], 4294966784  ;;  %v508_v0 = vmov 0.0   ;;  %vm509_vm0 = vmmov 0   ;;  %vm56_vm1 = vcmask 64512   ;;  %v135_v1 = vld [vmem:[#allocation3] sm:$0xff] }
  0x28   :  { %354 = vmatprep.subr.mxu0 %v508_v0  ;;  %356 = vmatprep.mubr.msk.f32.mxu0 %vm509_vm0, %v508_v0  ;;  %v55_v2 = vld [vmem:[#allocation6] sm:$0xff]  ;;  %v136_v3 = vld [vmem:[#allocation6 + $0x8] sm:$0xff]  ;;  %s510_s18 = smov 120   ;;  %v218_v4 = vld [vmem:[#allocation6 + $0x10] sm:$0xff]  ;;  %v511_v7 = vmov 0.0|0.0   ;;  %s512_s1 = smov 112  }
  0x29   :  { %359 = vmatprep.subr.mxu1 %v508_v0  ;;  %361 = vmatprep.mubr.msk.f32.mxu1 %vm509_vm0, %v508_v0  ;;  %v219_v5 = vld [vmem:[#allocation6 + $0x18] sm:$0xff]  ;;  %vm223_vm2 = vcmask 130048   ;;  %s513_s21 = smov [#allocation8]  }
  0x2a   :  { %138 = vrot.lane.b32.xlu0 %v135_v1, %s510_s18  ;;  %355 = vmatpush3.msra.mxu0 %v55_v2  ;;  %v372_v6 = vpack.c.bf16 %v219_v5, %v218_v4  ;;  %v343_v10 = vld [vmem:[%s623_s2] ss:$0 sm:$0xff]  ;;  %s306_s22 = sshll.u32 %s513_s21, 4  ;;  %s307_s22 = int_to_ptr.vmem [resolvable:$true] %s306_s22 }
  0x2b   :  { %357 = vmatmul.mubr.msk.f32.vlgmr.msra.gmra.mrb[0].mxu0 %vm56_vm1, %v135_v1  ;;  %360 = vmatpush3.msra.mxu1 %v136_v3  ;;  %s430_s23 = scalar_lea.vmem %s307_s22, 128  ;;  %p435_p3 = scmp.lt.s32.totalorder %s307_s22, %s307_s22 }
  0x2c   :  { %371 = vmatprep.subr.bf16.mxu0 %v511_v7  ;;  %368 = vmatprep.mubr.msk.f32.mxu0 %vm509_vm0, %v508_v0  ;;  %p431_p2 = scmp.ne.s32.totalorder %s307_s22, %s430_s23  ;;  %p436_p4 = scmp.lt.s32.totalorder %s430_s23, %s430_s23 }
  0x2d   :  { %373 = vmatpush3.bf16.msra.mxu0 %v372_v6 }
  0x2e   :  { %221 = vrot.lane.b32.xlu0 %v135_v1, %s512_s1  ;;  %p437_p5 = por %p436_p4, %p435_p3 }
  0x30   :  { %p438_p6 = pnand %p437_p5, %p431_p2 }
  0x9c   :  { %v139_v8 = vpop.permute.xlu0 %138 }
  0x9d   :  { %362 = vmatmul.mubr.msk.f32.vlgmr.msra.gmra.mrb[0].mxu1 %vm56_vm1, %v139_v8 }
  0xa0   :  { %v222_v9 = vpop.permute.xlu0 %221 }
  0xa1   :  { %369 = vmatmul.mubr.msk.f32.vlgmr.msra.gmra.mrb[2].mxu0 %vm223_vm2, %v222_v9 }
  0xfe   :  { %v126_v11 = vpop.f32.mrb[0].mxu0 }
  0xff   :  { %v130_v12 = vadd.f32 %v343_v10, %v126_v11  ;;  %v358_v13 = vpop.f32.mrb[1].mxu0 }
 0x101   :  { %133 = vst [vmem:[#allocation8] sm:$0xff] %v130_v12 }
 0x102   :  { %441 = shalt.err (!%p438_p6)
}
 0x103   :  { %s442_s26 = scalar_lea.hbm %s624_s3, 128 }
 0x104   :  { %p443_p7 = scmp.ne.s32.totalorder %s624_s3, %s442_s26  ;;  %p446_p8 = scmp.lt.u32.totalorder %s442_s26, %s624_s3 }
 0x106   :  { %p448_p9 = pnand %p446_p8, %p443_p7 }
 0x108   :  { %451 = shalt.err (!%p448_p9)
}
 0x109   :  { %309 = dma.vmem_to_hbm [thread:$0]  %s307_s22, 128, %s624_s3, [#allocation5]  }
 0x10a   :  { %s514_s7 = smov [#allocation9]   ;;  %s515_s9 = smov [#allocation11]  }
 0x10b   :  { %s316_s8 = sshll.u32 %s514_s7, 4  ;;  %s326_s10 = sshll.u32 %s515_s9, 4  ;;  %s317_s8 = int_to_ptr.vmem [resolvable:$true] %s316_s8  ;;  %s327_s10 = int_to_ptr.vmem [resolvable:$true] %s326_s10 }
 0x10c   :  { %s452_s11 = scalar_lea.vmem %s317_s8, 128  ;;  %p457_p11 = scmp.lt.s32.totalorder %s317_s8, %s317_s8 }
 0x10d   :  { %p453_p10 = scmp.ne.s32.totalorder %s317_s8, %s452_s11  ;;  %p458_p12 = scmp.lt.s32.totalorder %s452_s11, %s452_s11 }
 0x10f   :  { %p459_p13 = por %p458_p12, %p457_p11 }
 0x111   :  { %p460_p0 = pnand %p459_p13, %p453_p10 }
 0x170   :  { %v208_v14 = vpop.f32.mrb[0].mxu1 }
 0x171   :  { %v212_v15 = vadd.f32 %v208_v14, %v130_v12  ;;  %v363_v16 = vpop.f32.mrb[1].mxu1 }
 0x173   :  { %215 = vst [vmem:[#allocation9] sm:$0xff] %v212_v15 }
 0x174   :  { %v292_v17 = vpop.f32.mrb[2].mxu0 }
 0x175   :  { %463 = shalt.err (!%p460_p0)
}
 0x176   :  { %s464_s3 = scalar_lea.hbm %s625_s4, 128 }
 0x177   :  { %p465_p1 = scmp.ne.s32.totalorder %s625_s4, %s464_s3  ;;  %p468_p2 = scmp.lt.u32.totalorder %s464_s3, %s625_s4 }
 0x179   :  { %p470_p3 = pnand %p468_p2, %p465_p1 }
 0x17b   :  { %473 = shalt.err (!%p470_p3)
}
 0x17c   :  { %319 = dma.vmem_to_hbm [thread:$0]  %s317_s8, 128, %s625_s4, [#allocation10]   ;;  %v296_v18 = vadd.f32 %v292_v17, %v212_v15  ;;  %v370_v19 = vpop.f32.mrb[3].mxu0 }
 0x17d   :  { %s474_s1 = scalar_lea.vmem %s327_s10, 128  ;;  %p479_p5 = scmp.lt.s32.totalorder %s327_s10, %s327_s10 }
 0x17e   :  { %299 = vst [vmem:[#allocation11] sm:$0xff] %v296_v18  ;;  %p475_p4 = scmp.ne.s32.totalorder %s327_s10, %s474_s1  ;;  %p480_p6 = scmp.lt.s32.totalorder %s474_s1, %s474_s1 }
 0x180   :  { %p481_p7 = por %p480_p6, %p479_p5 }
 0x182   :  { %p482_p8 = pnand %p481_p7, %p475_p4 }
 0x184   :  { %485 = shalt.err (!%p482_p8)
}
 0x185   :  { %s486_s21 = scalar_lea.hbm %s626_s5, 128 }
 0x186   :  { %p487_p9 = scmp.ne.s32.totalorder %s626_s5, %s486_s21  ;;  %p490_p10 = scmp.lt.u32.totalorder %s486_s21, %s626_s5 }
 0x188   :  { %p492_p11 = pnand %p490_p10, %p487_p9 }
 0x18a   :  { %495 = shalt.err (!%p492_p11)
}
 0x18b   :  { %329 = dma.vmem_to_hbm [thread:$0]  %s327_s10, 128, %s626_s5, [#allocation10]  }
 0x18c   :  { %500 = dma.done.wait [#allocation5], 128  }
 0x18d   :  { %501 = vsyncadd [#allocation5], 4294967168 }
 0x18e   :  { %502 = dma.done.wait [#allocation10], 256  }
 0x18f   :  { %503 = vsyncadd [#allocation10], 4294967040 }
 0x190   :  { %339 = vsyncpa [#allocation4], 1 }
 0x191   :  { %340 = vsyncpa [#allocation7], 1 }
 0x192   :  { %341 = vsyncpa [#allocation5], 1 }
 0x193   :  { %342 = vsyncpa [#allocation10], 1 }

</bundles_post_ra>
